<compile_context>
chip_gen: v7x
topology: tpu7x:2x2x1
jax: 0.10.0
libtpu: 0.0.40
codegen_flags: <defaults>
</compile_context>

<pallas_src>
import math
import functools

import jax
import jax.numpy as jnp
from jax.experimental import pallas as pl
from jax.experimental.pallas import tpu as pltpu


def _amb_kernel(mem_t_ref, mem_ref, x_ref, out_ref, logits_ref, *, inv_sqrt_k):
    # mem_t_ref:  (M, K)          -- memory bank, pre-transposed (resident)
    # mem_ref:    (K, M)          -- memory bank (resident)
    # x_ref:      (1, K, TILE_N)  -- one (batch, N-tile) block
    # out_ref:    (1, K, TILE_N)
    # logits_ref: (1, M, TILE_N)
    m_t = mem_t_ref[...]                              # (M, K), native dtype
    m = mem_ref[...]                                  # (K, M), native dtype
    x = x_ref[0]                                      # (K, TILE_N), native dtype

    # logits = mem^T @ x / sqrt(K) -> (M, TILE_N); MXU with f32 accumulation.
    logits = jnp.dot(m_t, x, preferred_element_type=jnp.float32) * inv_sqrt_k

    # Softmax over the memory-slot axis (axis 0), matching F.softmax(_, dim=1)
    # on (B, M, N). Column-wise -> safe to tile N with no cross-tile state.
    mx = jnp.max(logits, axis=0, keepdims=True)
    p = jnp.exp(logits - mx)                          # (M, TILE_N) f32
    denom = jnp.sum(p, axis=0, keepdims=True)         # (1, TILE_N) f32

    # out = mem @ softmax(logits): fold the 1/denom AFTER the matmul (denom
    # broadcasts over the contracted M axis) -> K*TILE_N mults instead of
    # M*TILE_N, and no (M, TILE_N) `attn` temporary. Exact reciprocal keeps
    # parity with the PyTorch reference.
    out = jnp.dot(m, p, preferred_element_type=jnp.float32)   # (K, TILE_N)
    out = out * pl.reciprocal(denom, approx=False)

    out_ref[0] = out.astype(out_ref.dtype)
    logits_ref[0] = logits.astype(logits_ref.dtype)


def _round_up(v, m):
    return ((v + m - 1) // m) * m


def _pick_tile_n(n, batch, target=2048):
    """Balanced, lane-dense spatial tile (multiple of 128, waste < 128 cols)."""
    n_tiles = max(1, pl.cdiv(n, target))
    tile = _round_up(pl.cdiv(n, n_tiles), 128)
    # v7x has 2 TensorCores per chip: make sure the ("parallel","parallel")
    # grid has at least 2 independent units so neither core sits idle.
    while batch * pl.cdiv(n, tile) < 2 and tile > 128:
        tile = _round_up(pl.cdiv(tile, 2), 128)
    return tile


def _vmem_footprint_bytes(K, M, tile_n, x_itemsize, logits_itemsize):
    resident = 2 * 2 * K * M * x_itemsize                          # mem + mem^T (dbl-buffered)
    tiles = 2 * tile_n * (2 * K * x_itemsize + M * logits_itemsize)  # x/out/logits, dbl-buffered
    interm = 4 * tile_n * (2 * M + K)                              # f32 logits, p, out temporaries
    return resident + tiles + interm


def attention_memory_bank(x, mem, *, tile_n=None, logits_dtype=jnp.float32):
    """x: (B, K, H, W), mem: (1, K, mem_size).

    Returns (out, logits) with out: (B, K, H, W), logits: (B, mem_size, H*W).
    Set logits_dtype=jnp.bfloat16 to halve the dominant HBM writeback stream
    when the consumer tolerates it (default matches the PyTorch reference).
    """
    B, K, H, W = x.shape
    _, K2, M = mem.shape
    assert K == K2, "channel dim must equal mem_dim"
    N = H * W

    x_itemsize = jnp.dtype(x.dtype).itemsize
    logits_itemsize = jnp.dtype(logits_dtype).itemsize

    # Generation-aware VMEM budget (v5e/v6e: 128 MiB, v7x: 64 MiB per TC).
    try:
        vmem_cap = int(pltpu.get_tpu_info().vmem_capacity_bytes)
    except Exception:
        vmem_cap = 64 * 1024 * 1024  # conservative (v7x)

    if tile_n is None:
        tile_n = _pick_tile_n(N, B)
    # Shrink the tile if the pipelined footprint + in-kernel f32 intermediates
    # would crowd VMEM (protects double-buffering on v7x's 64 MiB).
    while (tile_n > 128 and
           _vmem_footprint_bytes(K, M, tile_n, x_itemsize, logits_itemsize)
           > int(0.6 * vmem_cap)):
        tile_n = _round_up(pl.cdiv(tile_n, 2), 128)

    n_tiles = pl.cdiv(N, tile_n)
    n_pad = n_tiles * tile_n

    x_flat = x.reshape(B, K, N)
    if n_pad != N:
        # Zero-pad so every tile/store is full and lane-dense; padded columns
        # are sliced off below.
        x_flat = jnp.pad(x_flat, ((0, 0), (0, 0), (0, n_pad - N)))
    mem2d = mem.reshape(K, M)
    mem_t = mem2d.T  # (M, K): avoids a per-grid-step relayout of the LHS.

    kernel = functools.partial(_amb_kernel, inv_sqrt_k=1.0 / math.sqrt(K))

    footprint = _vmem_footprint_bytes(K, M, tile_n, x_itemsize, logits_itemsize)
    vmem_limit = int(min(int(0.9 * vmem_cap),
                         max(32 * 1024 * 1024, 2 * footprint)))

    cost = pl.CostEstimate(
        flops=4 * B * K * M * n_pad,                       # two matmuls
        transcendentals=B * M * n_pad,                     # exp
        bytes_accessed=(
            B * n_pad * (2 * K * x_itemsize                # x read + out write
                         + M * logits_itemsize)            # logits write
            + 2 * K * M * x_itemsize                       # mem + mem^T read
        ),
    )

    out_flat, logits = pl.pallas_call(
        kernel,
        out_shape=(
            jax.ShapeDtypeStruct((B, K, n_pad), x.dtype),
            jax.ShapeDtypeStruct((B, M, n_pad), logits_dtype),
        ),
        grid_spec=pltpu.PrefetchScalarGridSpec(
            num_scalar_prefetch=0,
            grid=(B, n_tiles),
            in_specs=[
                pl.BlockSpec((M, K), lambda b, n: (0, 0)),             # mem^T (resident)
                pl.BlockSpec((K, M), lambda b, n: (0, 0)),             # mem   (resident)
                pl.BlockSpec((1, K, tile_n), lambda b, n: (b, 0, n)),  # x tile
            ],
            out_specs=[
                pl.BlockSpec((1, K, tile_n), lambda b, n: (b, 0, n)),
                pl.BlockSpec((1, M, tile_n), lambda b, n: (b, 0, n)),
            ],
        ),
        compiler_params=pltpu.CompilerParams(
            dimension_semantics=("parallel", "parallel"),
            vmem_limit_bytes=vmem_limit,
        ),
        cost_estimate=cost,
    )(mem_t, mem2d, x_flat)

    out = out_flat[..., :N].reshape(B, K, H, W)
    logits = logits[..., :N]
    return out, logits


def _reference(x, mem):
    B, K, H, W = x.shape
    M = mem.shape[-1]
    m = jnp.broadcast_to(mem, (B, K, M))
    m_key = jnp.swapaxes(m, 1, 2)                     # (B, M, K)
    xf = x.reshape(B, K, H * W)
    logits = jnp.einsum("bmk,bkn->bmn", m_key, xf) / math.sqrt(K)
    attn = jax.nn.softmax(logits, axis=1)
    out = jnp.einsum("bkm,bmn->bkn", m, attn).reshape(B, K, H, W)
    return out, logits


if __name__ == "__main__":
    # Small, TPU-tile-friendly shapes: B=2, K(mem_dim)=32, H=W=16 (N=256), mem_size=64.
    B, K, H, W = 2, 32, 16, 16
    MEM_SIZE = 64

    key = jax.random.PRNGKey(0)
    kx, km = jax.random.split(key)
    x = jax.random.normal(kx, (B, K, H, W), dtype=jnp.float32)
    # Deterministic init mirroring torch .normal_(0, 1.0)
    mem = jax.random.normal(km, (1, K, MEM_SIZE), dtype=jnp.float32)

    out, logits = attention_memory_bank(x, mem)
    out = jax.block_until_ready(out)
    logits = jax.block_until_ready(logits)

    # Sanity-check against a pure-JAX reference.
    ref_out, ref_logits = _reference(x, mem)
    assert out.shape == (B, K, H, W)
    assert logits.shape == (B, MEM_SIZE, H * W)
    assert jnp.allclose(logits, ref_logits, atol=1e-4, rtol=1e-4)
    assert jnp.allclose(out, ref_out, atol=1e-3, rtol=1e-3)

    print("KERNEL_OK")
</pallas_src>

<mosaic_0001>
module attributes {stable_mosaic.version = 11 : i64} {
  func.func @_amb_kernel(%arg0: i32, %arg1: i32, %arg2: memref<64x32xf32, #tpu.memory_space<vmem>>, %arg3: memref<32x64xf32, #tpu.memory_space<vmem>>, %arg4: memref<1x32x256xf32, #tpu.memory_space<vmem>>, %arg5: memref<1x32x256xf32, #tpu.memory_space<vmem>>, %arg6: memref<1x64x256xf32, #tpu.memory_space<vmem>>) attributes {dimension_semantics = [#tpu.dimension_semantics<parallel>, #tpu.dimension_semantics<parallel>], iteration_bounds = array<i64: 2, 1>, scalar_prefetch = 0 : i64, scratch_operands = 0 : i64, tpu.core_type = #tpu.core_type<tc>, window_params = [{pipeline_mode = #tpu.pipeline_mode<synchronous>, transform_indices = @transform_0, window_bounds = array<i64: 64, 32>}, {pipeline_mode = #tpu.pipeline_mode<synchronous>, transform_indices = @transform_1, window_bounds = array<i64: 32, 64>}, {transform_indices = @transform_2, window_bounds = array<i64: 1, 32, 256>}, {transform_indices = @transform_3, window_bounds = array<i64: 1, 32, 256>}, {transform_indices = @transform_4, window_bounds = array<i64: 1, 64, 256>}]} {
    %c0 = arith.constant 0 : index
    %c0_0 = arith.constant 0 : index
    %0 = vector.load %arg2[%c0, %c0_0] : memref<64x32xf32, #tpu.memory_space<vmem>>, vector<64x32xf32>
    %c0_1 = arith.constant 0 : index
    %c0_2 = arith.constant 0 : index
    %1 = vector.load %arg3[%c0_1, %c0_2] : memref<32x64xf32, #tpu.memory_space<vmem>>, vector<32x64xf32>
    %c0_3 = arith.constant 0 : index
    %c0_4 = arith.constant 0 : index
    %c0_5 = arith.constant 0 : index
    %2 = vector.load %arg4[%c0_3, %c0_4, %c0_5] : memref<1x32x256xf32, #tpu.memory_space<vmem>>, vector<1x32x256xf32>
    %3 = vector.shape_cast %2 : vector<1x32x256xf32> to vector<32x256xf32>
    %cst = arith.constant dense<0.000000e+00> : vector<64x256xf32>
    %4 = tpu.matmul %0, %3, %cst {dimension_numbers = #tpu.dot_dimension_numbers<[1], [0], [0], [1], [0, 0, 1, 1], [], []>} : vector<64x32xf32>, vector<32x256xf32>, vector<64x256xf32> -> vector<64x256xf32>
    %cst_6 = arith.constant 0.176776692 : f32
    %5 = vector.broadcast %cst_6 : f32 to vector<64x256xf32>
    %6 = arith.mulf %4, %5 : vector<64x256xf32>
    %cst_7 = arith.constant dense<0xFF800000> : vector<256xf32>
    %7 = vector.multi_reduction <maximumf>, %6, %cst_7 [0] : vector<64x256xf32> to vector<256xf32>
    %8 = vector.shape_cast %7 : vector<256xf32> to vector<1x256xf32>
    %9 = vector.broadcast %8 : vector<1x256xf32> to vector<64x256xf32>
    %10 = arith.subf %6, %9 : vector<64x256xf32>
    %11 = math.exp %10 : vector<64x256xf32>
    %cst_8 = arith.constant dense<0.000000e+00> : vector<256xf32>
    %12 = vector.multi_reduction <add>, %11, %cst_8 [0] : vector<64x256xf32> to vector<256xf32>
    %13 = vector.shape_cast %12 : vector<256xf32> to vector<1x256xf32>
    %cst_9 = arith.constant dense<0.000000e+00> : vector<32x256xf32>
    %14 = tpu.matmul %1, %11, %cst_9 {dimension_numbers = #tpu.dot_dimension_numbers<[1], [0], [0], [1], [0, 0, 1, 1], [], []>} : vector<32x64xf32>, vector<64x256xf32>, vector<32x256xf32> -> vector<32x256xf32>
    %15 = tpu.reciprocal %13 : vector<1x256xf32> -> vector<1x256xf32>
    %16 = vector.broadcast %15 : vector<1x256xf32> to vector<32x256xf32>
    %17 = arith.mulf %14, %16 : vector<32x256xf32>
    %c0_10 = arith.constant 0 : index
    %c0_11 = arith.constant 0 : index
    %c0_12 = arith.constant 0 : index
    %18 = vector.load %arg5[%c0_10, %c0_11, %c0_12] : memref<1x32x256xf32, #tpu.memory_space<vmem>>, vector<1x32x256xf32>
    %19 = vector.shape_cast %18 : vector<1x32x256xf32> to vector<32x256xf32>
    %20 = vector.shape_cast %17 : vector<32x256xf32> to vector<1x32x256xf32>
    tpu.vector_store %arg5[%c0_10, %c0_11, %c0_12], %20 {strides = array<i32>} : memref<1x32x256xf32, #tpu.memory_space<vmem>>, vector<1x32x256xf32>,
    %c0_13 = arith.constant 0 : index
    %c0_14 = arith.constant 0 : index
    %c0_15 = arith.constant 0 : index
    %21 = vector.load %arg6[%c0_13, %c0_14, %c0_15] : memref<1x64x256xf32, #tpu.memory_space<vmem>>, vector<1x64x256xf32>
    %22 = vector.shape_cast %21 : vector<1x64x256xf32> to vector<64x256xf32>
    %23 = vector.shape_cast %6 : vector<64x256xf32> to vector<1x64x256xf32>
    tpu.vector_store %arg6[%c0_13, %c0_14, %c0_15], %23 {strides = array<i32>} : memref<1x64x256xf32, #tpu.memory_space<vmem>>, vector<1x64x256xf32>,
    return
  }
  func.func @transform_0(%arg0: i32, %arg1: i32) -> (i32, i32) {
    %c0_i32 = arith.constant 0 : i32
    %c0_i32_0 = arith.constant 0 : i32
    %c0_i32_1 = arith.constant 0 : i32
    return %c0_i32, %c0_i32_0 : i32, i32
  }
  func.func @transform_1(%arg0: i32, %arg1: i32) -> (i32, i32) {
    %c0_i32 = arith.constant 0 : i32
    %c0_i32_0 = arith.constant 0 : i32
    %c0_i32_1 = arith.constant 0 : i32
    return %c0_i32, %c0_i32_0 : i32, i32
  }
  func.func @transform_2(%arg0: i32, %arg1: i32) -> (i32, i32, i32) {
    %c0_i32 = arith.constant 0 : i32
    %c0_i32_0 = arith.constant 0 : i32
    return %arg0, %c0_i32, %arg1 : i32, i32, i32
  }
  func.func @transform_3(%arg0: i32, %arg1: i32) -> (i32, i32, i32) {
    %c0_i32 = arith.constant 0 : i32
    %c0_i32_0 = arith.constant 0 : i32
    return %arg0, %c0_i32, %arg1 : i32, i32, i32
  }
  func.func @transform_4(%arg0: i32, %arg1: i32) -> (i32, i32, i32) {
    %c0_i32 = arith.constant 0 : i32
    %c0_i32_0 = arith.constant 0 : i32
    return %arg0, %c0_i32, %arg1 : i32, i32, i32
  }
}

</mosaic_0001>

<bundles_post_ra>
// kernel: tpu_custom_call.1
= control target key start
LH: loop header
LB: loop body
LE: loop exit
PB: predicated region body
PF: predicated region fallthrough
CT: control target
= control target key end

     0   :  { %10 = vsyncpa [#allocation3], 0  ;;  %s1529_s0 = inlined_call_operand.vmem [shape: f32[64,32], index: 0, kind: input, shape index: {}]   ;;  %s1530_s1 = inlined_call_operand.vmem [shape: f32[32,64], index: 1, kind: input, shape index: {}]   ;;  %s1531_s2 = inlined_call_operand.hbm [shape: f32[2,32,256], index: 2, kind: input, shape index: {}]   ;;  %s1532_s3 = inlined_call_operand.hbm [shape: f32[2,32,256], index: 3, kind: output, shape index: {0}]   ;;  %s1533_s4 = inlined_call_operand.hbm [shape: f32[2,64,256], index: 4, kind: output, shape index: {1}]  }
   0x1   :  { %12 = vsyncpa [#allocation3 + $0x1], 0 }
   0x2   :  { %13 = vsyncpa [#allocation4], 0 }
   0x3   :  { %15 = vsyncpa [#allocation4 + $0x1], 0 }
   0x4   :  { %16 = vsyncpa [#allocation7], 0 }
   0x5   :  { %18 = vsyncpa [#allocation7 + $0x1], 0  ;;  %s1166_s15 = smov 0   ;;  %s1168_s16 = smov 0  }
   0x6   :  { %s1170_s17 = smov 0   ;;  %s1172_s18 = smov 0  }
   0x7   :  { %s1174_s19 = smov 0   ;;  %s1176_s20 = smov 0  }
   0x8 LB: > { %s821_s21 = sadd.s32 4294967295, %s1131_s20   ;;  %s822_s22 = sadd.s32 4294967294, %s1131_s20   ;;  %s1131_s20 = sphi %s1176_s20, %s24_s20   ;;  %s1127_s19 = sphi %s1174_s19, %s1548_s19   ;;  %s1123_s18 = sphi %s1172_s18, %s1547_s18   ;;  %s1119_s17 = sphi %s1170_s17, %s1546_s17   ;;  %s1115_s16 = sphi %s1168_s16, %s1545_s16   ;;  %s1111_s15 = sphi %s1166_s15, %s1544_s15  }
   0x9   : > { %s36_s23 = sadd.s32 1, %s1127_s19  ;;  %s87_s24 = sadd.s32 1, %s1119_s17 }
   0xa   : > { %p38_p0 = scmp.ge.s32.totalorder %s36_s23, 2  ;;  %p94_p1 = scmp.ne.s32.totalorder %s1119_s17, %s1115_s16 }
   0xb   : > { %p95_p2 = scmp.eq.s32.totalorder %s1131_s20, 0  ;;  %p100_p3 = scmp.ne.s32.totalorder %s1115_s16, %s1111_s15 }
   0xc   : > { %s1550_s23 = smov (%p38_p0, %s36_s23), 0  ;;  %p101_p5 = scmp.eq.s32.totalorder %s821_s21, 0 }
   0xd   : > { %p1207_p4 = por %p95_p2, %p94_p1  ;;  %s82_s26 = ssub.s32 %s1127_s19, %s1550_s23 }
   0xe   : > { %p126_p6 = scmp.eq.s32.totalorder %s821_s21, 1  ;;  %p85_p7 = scmp.eq.s32.totalorder %s82_s26, 0 }
   0xf   : > { %p1213_p8 = por %p101_p5, %p100_p3  ;;  %p132_p10 = scmp.eq.s32.totalorder %s822_s22, 1 }
  0x10   : > { %p1217_p9 = por %p126_p6, %p94_p1  ;;  %p896_p13 = scmp.lt.s32.totalorder %s1131_s20, 2 }
  0x11   : > { %s1222_s29 = scalar_select %p85_p7, %s1119_s17, %s87_s24  }
  0x12   : > { %s1537_s28 = scalar_select %p1217_p9, 1, 0 }
  0x13   : > { %p1224_p11 = por %p132_p10, %p100_p3  ;;  %s186_s5 = sand.u32 1, %s1119_s17  }
  0x14   : > { %s825_s6 = sshll.u32 %s186_s5, 6  ;;  %s852_s7 = sshll.u32 %s1127_s19, 10 }
  0x15   : > { %s1538_s30 = scalar_select %p1224_p11, 1, 0 }
  0x16   : > { %s1235_s10 = scalar_lea.hbm %s1531_s2, %s852_s7  ;;  %s190_s11 = scalar_lea.vmem [#allocation2], %s825_s6 }
  0x17   : > { %s199_s12 = sshll.u32 %s190_s11, 4  ;;  %p1241_p0 = pnand %p896_p13, %p1207_p4  ;;  %s1237_s12 = int_to_ptr.vmem [resolvable:$true] %s199_s12 }
  0x18   : > { %s1246_s14 = scalar_lea.sflag [#allocation3], %s186_s5  ;;  %s987_s21 = scalar_lea.hbm %s1235_s10, 1024 }
  0x19   : > { %p988_p2 = scmp.ne.s32.totalorder %s1235_s10, %s987_s21  ;;  %p989_p3 = pneg %p1241_p0 }
  0x1a   : > { %s992_s25 = scalar_lea.hbm %s1531_s2, 2048  ;;  %p993_p4 = scmp.lt.u32.totalorder %s1235_s10, %s1531_s2 }
  0x1b   : > { %p990_p5 = pnand %p989_p3, %p988_p2  ;;  %p994_p7 = scmp.lt.u32.totalorder %s992_s25, %s987_s21 }
  0x1c   : > { %p996_p13 = scmp.lt.u32.totalorder %s987_s21, %s1235_s10 }
  0x1d   : > { %p991_p6 = pneg %p990_p5  ;;  %p995_p10 = por %p994_p7, %p993_p4 }
  0x1f   : > { %p997_p12 = por %p996_p13, %p995_p10 }
  0x21   : > { %p998_p1 = pnand %p997_p12, %p991_p6 }
  0x23   : > { %1001 = shalt.err (!%p998_p1)
}
  0x24   : > { %s1002_s5 = scalar_lea.vmem %s1237_s12, 1024  ;;  %s1133_s7 = smov [#allocation2]  }
  0x25   : > { %p1003_p2 = scmp.ne.s32.totalorder %s1237_s12, %s1002_s5  ;;  %s1007_s8 = sshll.u32 %s1133_s7, 4  ;;  %s1008_s8 = int_to_ptr.vmem [resolvable:$false] %s1007_s8 }
  0x26   : > { %s1009_s9 = scalar_lea.vmem %s1008_s8, 2048  ;;  %p1010_p9 = scmp.lt.s32.totalorder %s1237_s12, %s1008_s8 }
  0x27   : > { %p1005_p5 = pnand %p1003_p2, %p989_p3  ;;  %p1011_p4 = scmp.lt.s32.totalorder %s1009_s9, %s1002_s5 }
  0x29   : > { %p1006_p11 = pneg %p1005_p5  ;;  %p1012_p7 = por %p1011_p4, %p1010_p9 }
  0x2b   : > { %p1013_p10 = pnand %p1012_p7, %p1006_p11 }
  0x2d   : > { %1016 = shalt.err (!%p1013_p10)
}
  0x2e   : > { %s1134_s11 = smov 256   ;;  %s1135_s21 = smov 16  }
  0x2f   : > { %888 = dma.hbm_to_vmem [thread:$0]  (!%p1241_p0), %s1235_s10, 1024, %s1237_s12, %s1246_s14, %s1134_s11, %s1134_s11, %s1135_s21  }
  0x30   : > { %p207_p12 = scmp.lt.s32.totalorder %s1131_s20, 3  ;;  %p1540_p1 = scmp.ge.s32.totalorder %s1131_s20, 1 }
  0x32   : > { %p208_p3 = pnand %p1540_p1, %p207_p12 }
  0x33   : > { %s1278_s22 = sand.u32 (!%p208_p3), 1, %s1115_s16  }
  0x34   : > { %211 = sbr.rel (%p208_p3) target bundleno = 607 (0x25f), region = 32  ;;  %s829_s24 = sshll.u32 (!%p208_p3), %s1278_s22, 6 }
  0x35   : > { %s214_s25 = scalar_lea.sflag (!%p208_p3), [#allocation3], %s1278_s22  ;;  %s217_s26 = scalar_lea.vmem (!%p208_p3), [#allocation2], %s829_s24 }
  0x3b   : > { %1098 = dma.done.wait (%p1213_p8), %s214_s25, 1024  }
  0x3c   : > { %1100 = vsyncadd (%p1213_p8), %s214_s25, 4294966272  ;;  %v1136_v0 = vmov 0.0   ;;  %v263_v1 = vld [vmem:[%s217_s26 + $0x8] sm:$0xff]  ;;  %v265_v2 = vld [vmem:[%s217_s26 + $0x18] sm:$0xff]  ;;  %vm270_vm0 = vcmask 261120   ;;  %s831_s12 = sshll.u32 %s1278_s22, 7 }
  0x3d   : > { %359 = vmatprep.mubr.f32.mxu0 %v1136_v0  ;;  %601 = vmatprep.mubr.f32.mxu1 %v1136_v0  ;;  %v262_v3 = vld [vmem:[%s217_s26] sm:$0xff]  ;;  %v855_v4 = vpack.c.bf16 %v265_v2, %v263_v1  ;;  %v264_v5 = vld [vmem:[%s217_s26 + $0x10] sm:$0xff]  ;;  %v267_v6 = vld [vmem:[%s217_s26 + $0x28] sm:$0xff]  ;;  %s1334_s13 = scalar_lea.vmem [#allocation6], %s831_s12  ;;  %vm524_vm1 = vcmask 523264   ;;  %s854_s25 = sshll.u32 %s1123_s18, 11 }
  0x3e   : > { %v269_v7 = vld [vmem:[%s217_s26 + $0x38] sm:$0xff]  ;;  %v857_v8 = vpack.c.bf16 %v264_v5, %v262_v3  ;;  %v266_v10 = vld [vmem:[%s217_s26 + $0x20] sm:$0xff]  ;;  %v268_v11 = vld [vmem:[%s217_s26 + $0x30] sm:$0xff]  ;;  %s699_s26 = sshll.u32 %s1334_s13, 4  ;;  %s1438_s12 = scalar_lea.hbm %s1533_s4, %s854_s25  ;;  %s1440_s26 = int_to_ptr.vmem [resolvable:$true] %s699_s26 }
  0x3f   : > { %v859_v9 = vpack.c.bf16 %v269_v7, %v267_v6  ;;  %856 = vmatprep.subr.bf16.mxu0 %v855_v4  ;;  %v861_v12 = vpack.c.bf16 %v268_v11, %v266_v10  ;;  %v250_v13 = vld [vmem:[%s1529_s0] sm:$0xff]  ;;  %v251_v14 = vld [vmem:[%s1529_s0 + $0x8] sm:$0xff]  ;;  %v252_v15 = vld [vmem:[%s1529_s0 + $0x10] sm:$0xff]  ;;  %s666_s14 = scalar_lea.sflag [#allocation7], %s1278_s22  ;;  %s1017_s6 = scalar_lea.vmem %s1440_s26, 2048 }
  0x40   : > { %858 = vmatpush1.bf16.msra.mxu0 %v857_v8  ;;  %v253_v16 = vld [vmem:[%s1529_s0 + $0x18] sm:$0xff]  ;;  %v254_v17 = vld [vmem:[%s1529_s0 + $0x20] sm:$0xff]  ;;  %v255_v18 = vld [vmem:[%s1529_s0 + $0x28] sm:$0xff]  ;;  %p1018_p8 = scmp.ne.s32.totalorder %s1440_s26, %s1017_s6  ;;  %p1541_p9 = scmp.ne.s32.totalorder %s1537_s28, 0 }
  0x41   : > { %860 = vmatprep.subr.bf16.mxu0 %v859_v9  ;;  %v256_v19 = vld [vmem:[%s1529_s0 + $0x30] sm:$0xff]  ;;  %v257_v20 = vld [vmem:[%s1529_s0 + $0x38] sm:$0xff]  ;;  %s1137_s5 = smov [#allocation6]  }
  0x42   : > { %p1019_p11 = pnand %p1018_p8, %p1541_p9  ;;  %s1021_s7 = sshll.u32 %s1137_s5, 4  ;;  %s1022_s7 = int_to_ptr.vmem [resolvable:$false] %s1021_s7 }
  0x43   : > { %p1024_p6 = scmp.lt.s32.totalorder %s1440_s26, %s1022_s7 }
  0x44   : > { %862 = vmatpush1.bf16.msra.mxu0 %v861_v12  ;;  %p1020_p0 = pneg %p1019_p11 }
  0x47   : > { %832 = vmatmul.mubr.msk.f32.vlgmr.msra.gmra.mrb[0].mxu0 %vm270_vm0, %v250_v13 }
  0x48   : > { %365 = vmatprep.mubr.f32.mxu0 %v1136_v0 }
  0x4b   : > { %833 = vmatmul.mubr.msk.f32.gmra.mrb[2].mxu0 %vm270_vm0, %v251_v14 }
  0x4c   : > { %371 = vmatprep.mubr.f32.mxu0 %v1136_v0 }
  0x4f   : > { %834 = vmatmul.mubr.msk.f32.gmra.mrb[4].mxu0 %vm270_vm0, %v252_v15 }
  0x50   : > { %377 = vmatprep.mubr.f32.mxu0 %v1136_v0 }
  0x53   : > { %835 = vmatmul.mubr.msk.f32.gmra.mrb[6].mxu0 %vm270_vm0, %v253_v16 }
  0x54   : > { %383 = vmatprep.mubr.f32.mxu0 %v1136_v0 }
  0x57   : > { %836 = vmatmul.mubr.msk.f32.gmra.mrb[8].mxu0 %vm270_vm0, %v254_v17 }
  0x58   : > { %389 = vmatprep.mubr.f32.mxu0 %v1136_v0 }
  0x5b   : > { %837 = vmatmul.mubr.msk.f32.gmra.mrb[10].mxu0 %vm270_vm0, %v255_v18 }
  0x5c   : > { %395 = vmatprep.mubr.f32.mxu0 %v1136_v0 }
  0x5f   : > { %838 = vmatmul.mubr.msk.f32.gmra.mrb[12].mxu0 %vm270_vm0, %v256_v19 }
  0x60   : > { %401 = vmatprep.mubr.f32.mxu0 %v1136_v0 }
  0x63   : > { %839 = vmatmul.mubr.msk.f32.gmra.mrb[14].mxu0 %vm270_vm0, %v257_v20 }
 0x11a   : > { %v361_v21 = vpop.f32.mrb[0].mxu0 }
 0x11b   : > { %v1330_v22 = vmul.f32 0.17677669, %v361_v21  ;;  %v363_v23 = vpop.f32.mrb[1].mxu0 }
 0x11c   : > { %v1332_v24 = vmul.f32 0.17677669, %v363_v23 }
 0x11d   : > { %644 = vst [vmem:[%s1334_s13] sm:$0xff] %v1330_v22 }
 0x11e   : > { %645 = vst [vmem:[%s1334_s13 + $0x8] sm:$0xff] %v1332_v24  ;;  %v367_v25 = vpop.f32.mrb[2].mxu0 }
 0x11f   : > { %v1340_v26 = vmul.f32 0.17677669, %v367_v25  ;;  %v369_v27 = vpop.f32.mrb[3].mxu0 }
 0x120   : > { %v1342_v28 = vmul.f32 0.17677669, %v369_v27 }
 0x121   : > { %646 = vst [vmem:[%s1334_s13 + $0x10] sm:$0xff] %v1340_v26 }
 0x122   : > { %647 = vst [vmem:[%s1334_s13 + $0x18] sm:$0xff] %v1342_v28  ;;  %v373_v29 = vpop.f32.mrb[4].mxu0 }
 0x123   : > { %v1348_v30 = vmul.f32 0.17677669, %v373_v29  ;;  %v375_v31 = vpop.f32.mrb[5].mxu0 }
 0x124   : > { %v1350_v32 = vmul.f32 0.17677669, %v375_v31 }
 0x125   : > { %v424_v33 = vmax.f32 %v1330_v22, %v1348_v30  ;;  %648 = vst [vmem:[%s1334_s13 + $0x20] sm:$0xff] %v1348_v30 }
 0x126   : > { %v437_v34 = vmax.f32 %v1332_v24, %v1350_v32  ;;  %649 = vst [vmem:[%s1334_s13 + $0x28] sm:$0xff] %v1350_v32  ;;  %v379_v35 = vpop.f32.mrb[6].mxu0 }
 0x127   : > { %v1360_v36 = vmul.f32 0.17677669, %v379_v35  ;;  %v381_v37 = vpop.f32.mrb[7].mxu0 }
 0x128   : > { %v1362_v38 = vmul.f32 0.17677669, %v381_v37 }
 0x129   : > { %v425_v39 = vmax.f32 %v1340_v26, %v1360_v36  ;;  %650 = vst [vmem:[%s1334_s13 + $0x30] sm:$0xff] %v1360_v36 }
 0x12a   : > { %v438_v40 = vmax.f32 %v1342_v28, %v1362_v38  ;;  %651 = vst [vmem:[%s1334_s13 + $0x38] sm:$0xff] %v1362_v38  ;;  %v385_v41 = vpop.f32.mrb[8].mxu0 }
 0x12b   : > { %v1372_v42 = vmul.f32 0.17677669, %v385_v41  ;;  %v387_v43 = vpop.f32.mrb[9].mxu0 }
 0x12c   : > { %v1374_v44 = vmul.f32 0.17677669, %v387_v43 }
 0x12d   : > { %v426_v45 = vmax.f32 %v424_v33, %v1372_v42  ;;  %652 = vst [vmem:[%s1334_s13 + $0x40] sm:$0xff] %v1372_v42 }
 0x12e   : > { %v439_v46 = vmax.f32 %v437_v34, %v1374_v44  ;;  %653 = vst [vmem:[%s1334_s13 + $0x48] sm:$0xff] %v1374_v44  ;;  %v391_v47 = vpop.f32.mrb[10].mxu0 }
 0x12f   : > { %v1382_v48 = vmul.f32 0.17677669, %v391_v47  ;;  %v393_v49 = vpop.f32.mrb[11].mxu0 }
 0x130   : > { %v1384_v50 = vmul.f32 0.17677669, %v393_v49 }
 0x131   : > { %v427_v51 = vmax.f32 %v425_v39, %v1382_v48  ;;  %654 = vst [vmem:[%s1334_s13 + $0x50] sm:$0xff] %v1382_v48 }
 0x132   : > { %v440_v52 = vmax.f32 %v438_v40, %v1384_v50  ;;  %655 = vst [vmem:[%s1334_s13 + $0x58] sm:$0xff] %v1384_v50  ;;  %v397_v53 = vpop.f32.mrb[12].mxu0 }
 0x133   : > { %v1392_v54 = vmul.f32 0.17677669, %v397_v53  ;;  %v399_v55 = vpop.f32.mrb[13].mxu0 }
 0x134   : > { %v1394_v56 = vmul.f32 0.17677669, %v399_v55 }
 0x135   : > { %v428_v57 = vmax.f32 %v426_v45, %v1392_v54  ;;  %656 = vst [vmem:[%s1334_s13 + $0x60] sm:$0xff] %v1392_v54 }
 0x136   : > { %v441_v58 = vmax.f32 %v439_v46, %v1394_v56  ;;  %657 = vst [vmem:[%s1334_s13 + $0x68] sm:$0xff] %v1394_v56  ;;  %v403_v59 = vpop.f32.mrb[14].mxu0 }
 0x137   : > { %v422_v60 = vmul.f32 0.17677669, %v403_v59  ;;  %v405_v61 = vpop.f32.mrb[15].mxu0 }
 0x138   : > { %v423_v62 = vmul.f32 0.17677669, %v405_v61 }
 0x139   : > { %v429_v63 = vmax.f32 %v427_v51, %v422_v60  ;;  %658 = vst [vmem:[%s1334_s13 + $0x70] sm:$0xff] %v422_v60 }
 0x13a   : > { %v442_v1 = vmax.f32 %v440_v52, %v423_v62  ;;  %659 = vst [vmem:[%s1334_s13 + $0x78] sm:$0xff] %v423_v62  ;;  %s1023_s13 = scalar_lea.vmem %s1022_s7, 4096 }
 0x13b   : > { %v430_v2 = vmax.f32 %v428_v57, %v429_v63  ;;  %p1025_p13 = scmp.lt.s32.totalorder %s1023_s13, %s1017_s6 }
 0x13c   : > { %v443_v3 = vmax.f32 %v441_v58, %v442_v1 }
 0x13d   : > { %v431_v4 = vrot.slane %v430_v2, 4  ;;  %p1026_p2 = por %p1025_p13, %p1024_p6 }
 0x13e   : > { %v444_v5 = vrot.slane %v443_v3, 4 }
 0x13f   : > { %v432_v6 = vmax.f32 %v430_v2, %v431_v4  ;;  %p1027_p5 = pnand %p1026_p2, %p1020_p0 }
 0x140   : > { %v445_v7 = vmax.f32 %v443_v3, %v444_v5 }
 0x141   : > { %v433_v8 = vrot.slane %v432_v6, 2 }
 0x142   : > { %v446_v9 = vrot.slane %v445_v7, 2 }
 0x143   : > { %v434_v10 = vmax.f32 %v432_v6, %v433_v8 }
 0x144   : > { %v447_v11 = vmax.f32 %v445_v7, %v446_v9 }
 0x145   : > { %v435_v12 = vrot.slane %v434_v10, 1 }
 0x146   : > { %v448_v13 = vrot.slane %v447_v11, 1 }
 0x147   : > { %v436_v14 = vmax.f32 %v434_v10, %v435_v12 }
 0x148   : > { %v449_v15 = vmax.f32 %v447_v11, %v448_v13 }
 0x149   : > { %v464_v16 = vsub.f32 %v422_v60, %v436_v14  ;;  %v450_v17 = vsub.f32 %v1330_v22, %v436_v14  ;;  %v452_v18 = vsub.f32 %v1340_v26, %v436_v14  ;;  %v454_v19 = vsub.f32 %v1348_v30, %v436_v14 }
 0x14a   : > { %v465_v20 = vsub.f32 %v423_v62, %v449_v15  ;;  %v451_v21 = vsub.f32 %v1332_v24, %v449_v15  ;;  %v453_v23 = vsub.f32 %v1342_v28, %v449_v15  ;;  %v455_v25 = vsub.f32 %v1350_v32, %v449_v15 }
 0x14b   : > { %v494_v27 = vmul.f32 1.442695, %v464_v16  ;;  %v457_v29 = vsub.f32 %v1362_v38, %v449_v15  ;;  %v456_v35 = vsub.f32 %v1360_v36, %v436_v14  ;;  %v466_v22 = vmul.f32 1.442695, %v450_v17 }
 0x14c   : > { %v496_v31 = vmul.f32 1.442695, %v465_v20  ;;  %v468_v33 = vmul.f32 1.442695, %v451_v21  ;;  %v472_v34 = vmul.f32 1.442695, %v453_v23  ;;  %v459_v37 = vsub.f32 %v1374_v44, %v449_v15 }
 0x14d   : > { %951 = vpow2.f32 %v494_v27  ;;  %v470_v26 = vmul.f32 1.442695, %v452_v18  ;;  %v476_v30 = vmul.f32 1.442695, %v455_v25  ;;  %v461_v24 = vsub.f32 %v1384_v50, %v449_v15  ;;  %v258_v25 = vld [vmem:[%s1530_s1] sm:$0xff]  ;;  %v259_v27 = vld [vmem:[%s1530_s1 + $0x8] sm:$0xff] }
 0x14e   : > { %953 = vpow2.f32 %v496_v31  ;;  %v458_v28 = vsub.f32 %v1372_v42, %v436_v14  ;;  %v460_v32 = vsub.f32 %v1382_v48, %v436_v14  ;;  %v463_v38 = vsub.f32 %v1394_v56, %v449_v15  ;;  %v261_v31 = vld [vmem:[%s1530_s1 + $0x18] sm:$0xff] }
 0x14f   : > { %955 = vpow2.f32 %v468_v33  ;;  %v480_v39 = vmul.f32 1.442695, %v457_v29  ;;  %v462_v36 = vsub.f32 %v1392_v54, %v436_v14  ;;  %v474_v40 = vmul.f32 1.442695, %v454_v19  ;;  %v260_v29 = vld [vmem:[%s1530_s1 + $0x10] sm:$0xff] }
 0x150   : > { %957 = vpow2.f32 %v472_v34  ;;  %v478_v41 = vmul.f32 1.442695, %v456_v35  ;;  %v484_v43 = vmul.f32 1.442695, %v459_v37  ;;  %v488_v44 = vmul.f32 1.442695, %v461_v24 }
 0x151   : > { %959 = vpow2.f32 %v466_v22  ;;  %v482_v45 = vmul.f32 1.442695, %v458_v28  ;;  %v486_v42 = vmul.f32 1.442695, %v460_v32  ;;  %v492_v47 = vmul.f32 1.442695, %v463_v38 }
 0x152   : > { %961 = vpow2.f32 %v470_v26  ;;  %v490_v49 = vmul.f32 1.442695, %v462_v36 }
 0x153   : > { %963 = vpow2.f32 %v476_v30 }
 0x154   : > { %965 = vpow2.f32 %v480_v39 }
 0x155   : > { %967 = vpow2.f32 %v474_v40 }
 0x156   : > { %969 = vpow2.f32 %v478_v41 }
 0x157   : > { %v952_v46 = vpop.eup %951  ;;  %971 = vpow2.f32 %v484_v43 }
 0x158   : > { %v954_v48 = vpop.eup %953  ;;  %973 = vpow2.f32 %v488_v44 }
 0x159   : > { %v956_v50 = vpop.eup %955  ;;  %975 = vpow2.f32 %v482_v45 }
 0x15a   : > { %v958_v51 = vpop.eup %957  ;;  %977 = vpow2.f32 %v486_v42 }
 0x15b   : > { %v960_v52 = vpop.eup %959  ;;  %v511_v53 = vadd.f32 %v958_v51, %v956_v50  ;;  %v863_v54 = vpack.c.bf16 %v958_v51, %v956_v50  ;;  %979 = vpow2.f32 %v492_v47 }
 0x15c   : > { %v962_v55 = vpop.eup %961  ;;  %981 = vpow2.f32 %v490_v49 }
 0x15d   : > { %v964_v56 = vpop.eup %963  ;;  %864 = vmatprep.subr.bf16.mxu1 %v863_v54  ;;  %v498_v57 = vadd.f32 %v962_v55, %v960_v52  ;;  %v865_v58 = vpack.c.bf16 %v962_v55, %v960_v52 }
 0x15e   : > { %v966_v59 = vpop.eup %965  ;;  %v512_v60 = vadd.f32 %v964_v56, %v511_v53 }
 0x15f   : > { %v968_v61 = vpop.eup %967  ;;  %866 = vmatpush1.bf16.msra.mxu1 %v865_v58  ;;  %v867_v62 = vpack.c.bf16 %v966_v59, %v964_v56 }
 0x160   : > { %v970_v63 = vpop.eup %969  ;;  %v513_v1 = vadd.f32 %v966_v59, %v512_v60  ;;  %v499_v2 = vadd.f32 %v968_v61, %v498_v57 }
 0x161   : > { %v972_v3 = vpop.eup %971  ;;  %868 = vmatprep.subr.bf16.mxu1 %v867_v62  ;;  %v869_v4 = vpack.c.bf16 %v970_v63, %v968_v61 }
 0x162   : > { %v974_v5 = vpop.eup %973  ;;  %v500_v6 = vadd.f32 %v970_v63, %v499_v2  ;;  %v514_v7 = vadd.f32 %v972_v3, %v513_v1 }
 0x163   : > { %v976_v8 = vpop.eup %975  ;;  %870 = vmatpush1.bf16.msra.mxu1 %v869_v4  ;;  %v871_v9 = vpack.c.bf16 %v974_v5, %v972_v3 }
 0x164   : > { %v978_v10 = vpop.eup %977  ;;  %v515_v11 = vadd.f32 %v974_v5, %v514_v7  ;;  %v501_v12 = vadd.f32 %v976_v8, %v500_v6 }
 0x165   : > { %v980_v13 = vpop.eup %979  ;;  %872 = vmatprep.subr.bf16.mxu1 %v871_v9  ;;  %v873_v14 = vpack.c.bf16 %v978_v10, %v976_v8 }
 0x166   : > { %v982_v15 = vpop.eup %981  ;;  %v502_v16 = vadd.f32 %v978_v10, %v501_v12  ;;  %v516_v17 = vadd.f32 %v980_v13, %v515_v11  ;;  %v875_v18 = vpack.c.bf16 %v954_v48, %v980_v13 }
 0x167   : > { %874 = vmatpush1.bf16.msra.mxu1 %v873_v14  ;;  %v877_v19 = vpack.c.bf16 %v952_v46, %v982_v15 }
 0x168   : > { %v517_v20 = vadd.f32 %v954_v48, %v516_v17  ;;  %876 = vmatprep.subr.bf16.mxu1 %v875_v18  ;;  %v503_v21 = vadd.f32 %v982_v15, %v502_v16 }
 0x16a   : > { %v504_v23 = vadd.f32 %v952_v46, %v503_v21 }
 0x16b   : > { %878 = vmatpush1.bf16.msra.mxu1 %v877_v19 }
 0x16e   : > { %840 = vmatmul.mubr.msk.f32.vlgmr.msra.gmra.mrb[0].mxu1 %vm524_vm1, %v258_v25 }
 0x16f   : > { %607 = vmatprep.mubr.f32.mxu1 %v1136_v0 }
 0x172   : > { %841 = vmatmul.mubr.msk.f32.gmra.mrb[2].mxu1 %vm524_vm1, %v259_v27 }
 0x173   : > { %613 = vmatprep.mubr.f32.mxu1 %v1136_v0 }
 0x176   : > { %842 = vmatmul.mubr.msk.f32.gmra.mrb[4].mxu1 %vm524_vm1, %v260_v29 }
 0x177   : > { %619 = vmatprep.mubr.f32.mxu1 %v1136_v0 }
 0x17a   : > { %843 = vmatmul.mubr.msk.f32.gmra.mrb[6].mxu1 %vm524_vm1, %v261_v31 }
 0x17b   : > { %1030 = shalt.err (!%p1027_p5)
}
 0x17c   : > { %s1031_s8 = scalar_lea.hbm %s1438_s12, 2048  ;;  %s1035_s21 = scalar_lea.hbm %s1533_s4, 4096 }
 0x17d   : > { %p1032_p4 = scmp.ne.s32.totalorder %s1438_s12, %s1031_s8  ;;  %p1036_p12 = scmp.lt.u32.totalorder %s1438_s12, %s1533_s4 }
 0x17e   : > { %p1037_p1 = scmp.lt.u32.totalorder %s1035_s21, %s1031_s8  ;;  %p1039_p8 = scmp.lt.u32.totalorder %s1031_s8, %s1438_s12 }
 0x17f   : > { %p1033_p7 = pnand %p1032_p4, %p1541_p9 }
 0x180   : > { %p1038_p3 = por %p1037_p1, %p1036_p12 }
 0x181   : > { %p1034_p10 = pneg %p1033_p7 }
 0x182   : > { %p1040_p11 = por %p1039_p8, %p1038_p3 }
 0x184   : > { %p1041_p0 = pnand %p1040_p11, %p1034_p10 }
 0x186   : > { %1044 = shalt.err (!%p1041_p0)
}
 0x187   : > { %s1138_s10 = smov 256   ;;  %s1139_s6 = smov 16   ;;  %v505_v0 = vrot.slane %v504_v23, 4  ;;  %v518_v33 = vrot.slane %v517_v20, 4 }
 0x188   : > { %882 = dma.vmem_to_hbm [thread:$0]  (%p1541_p9), %s1440_s26, 2048, %s1438_s12, %s666_s14, %s1138_s10, %s1138_s10, %s1139_s6  }
 0x189   : > { %v506_v34 = vadd.f32 %v505_v0, %v504_v23  ;;  %v519_v35 = vadd.f32 %v518_v33, %v517_v20  ;;  %s239_s26 = scalar_lea.vmem [#allocation5], %s829_s24  ;;  %s853_s14 = sshll.u32 %s1123_s18, 10 }
 0x18a   : > { %s681_s12 = sshll.u32 %s239_s26, 4  ;;  %s1477_s7 = scalar_lea.hbm %s1532_s3, %s853_s14  ;;  %s1472_s12 = int_to_ptr.vmem [resolvable:$true] %s681_s12 }
 0x18b   : > { %v507_v22 = vrot.slane %v506_v34, 2  ;;  %v520_v26 = vrot.slane %v519_v35, 2  ;;  %s661_s13 = scalar_lea.sflag [#allocation4], %s1278_s22  ;;  %s1045_s8 = scalar_lea.vmem %s1472_s12, 1024 }
 0x18c   : > { %p1046_p6 = scmp.ne.s32.totalorder %s1472_s12, %s1045_s8  ;;  %s1140_s18 = smov [#allocation5]  }
 0x18d   : > { %v508_v30 = vadd.f32 %v507_v22, %v506_v34  ;;  %v521_v37 = vadd.f32 %v520_v26, %v519_v35  ;;  %s1049_s9 = sshll.u32 %s1140_s18, 4  ;;  %s1050_s9 = int_to_ptr.vmem [resolvable:$false] %s1049_s9 }
 0x18e   : > { %p1047_p13 = pnand %p1046_p6, %p1541_p9  ;;  %s1051_s11 = scalar_lea.vmem %s1050_s9, 2048 }
 0x18f   : > { %v509_v24 = vrot.slane %v508_v30, 1  ;;  %v522_v28 = vrot.slane %v521_v37, 1  ;;  %p1052_p5 = scmp.lt.s32.totalorder %s1472_s12, %s1050_s9  ;;  %p1053_p4 = scmp.lt.s32.totalorder %s1051_s11, %s1045_s8 }
 0x190   : > { %p1048_p2 = pneg %p1047_p13 }
 0x191   : > { %v510_v32 = vadd.f32 %v509_v24, %v508_v30  ;;  %v523_v38 = vadd.f32 %v522_v28, %v521_v37  ;;  %p1054_p7 = por %p1053_p4, %p1052_p5 }
 0x193   : > { %983 = vrcp.f32 %v510_v32  ;;  %p1055_p10 = pnand %p1054_p7, %p1048_p2 }
 0x194   : > { %985 = vrcp.f32 %v523_v38 }
 0x19d   : > { %v984_v39 = vpop.eup %983 }
 0x19e   : > { %v986_v40 = vpop.eup %985 }
 0x241   : > { %v603_v36 = vpop.f32.mrb[0].mxu1 }
 0x242   : > { %v628_v41 = vmul.f32 %v984_v39, %v603_v36  ;;  %v605_v43 = vpop.f32.mrb[1].mxu1 }
 0x243   : > { %v629_v44 = vmul.f32 %v986_v40, %v605_v43 }
 0x244   : > { %636 = vst [vmem:[%s239_s26] sm:$0xff] %v628_v41 }
 0x245   : > { %637 = vst [vmem:[%s239_s26 + $0x8] sm:$0xff] %v629_v44  ;;  %v609_v45 = vpop.f32.mrb[2].mxu1 }
 0x246   : > { %v630_v42 = vmul.f32 %v984_v39, %v609_v45  ;;  %v611_v46 = vpop.f32.mrb[3].mxu1 }
 0x247   : > { %v631_v47 = vmul.f32 %v986_v40, %v611_v46 }
 0x248   : > { %638 = vst [vmem:[%s239_s26 + $0x10] sm:$0xff] %v630_v42 }
 0x249   : > { %639 = vst [vmem:[%s239_s26 + $0x18] sm:$0xff] %v631_v47  ;;  %v615_v48 = vpop.f32.mrb[4].mxu1 }
 0x24a   : > { %v632_v49 = vmul.f32 %v984_v39, %v615_v48  ;;  %v617_v50 = vpop.f32.mrb[5].mxu1 }
 0x24b   : > { %v633_v51 = vmul.f32 %v986_v40, %v617_v50 }
 0x24c   : > { %640 = vst [vmem:[%s239_s26 + $0x20] sm:$0xff] %v632_v49 }
 0x24d   : > { %641 = vst [vmem:[%s239_s26 + $0x28] sm:$0xff] %v633_v51  ;;  %v621_v52 = vpop.f32.mrb[6].mxu1 }
 0x24e   : > { %v634_v53 = vmul.f32 %v984_v39, %v621_v52  ;;  %v623_v54 = vpop.f32.mrb[7].mxu1 }
 0x24f   : > { %v635_v55 = vmul.f32 %v986_v40, %v623_v54 }
 0x250   : > { %642 = vst [vmem:[%s239_s26 + $0x30] sm:$0xff] %v634_v53 }
 0x251   : > { %643 = vst [vmem:[%s239_s26 + $0x38] sm:$0xff] %v635_v55 }
 0x252   : > { %1058 = shalt.err (!%p1055_p10)
}
 0x253   : > { %s1059_s21 = scalar_lea.hbm %s1477_s7, 1024  ;;  %s1063_s26 = scalar_lea.hbm %s1532_s3, 2048 }
 0x254   : > { %p1060_p12 = scmp.ne.s32.totalorder %s1477_s7, %s1059_s21  ;;  %p1064_p8 = scmp.lt.u32.totalorder %s1477_s7, %s1532_s3 }
 0x255   : > { %p1065_p11 = scmp.lt.u32.totalorder %s1063_s26, %s1059_s21  ;;  %p1067_p6 = scmp.lt.u32.totalorder %s1059_s21, %s1477_s7 }
 0x256   : > { %p1061_p1 = pnand %p1060_p12, %p1541_p9 }
 0x257   : > { %p1066_p0 = por %p1065_p11, %p1064_p8 }
 0x258   : > { %p1062_p3 = pneg %p1061_p1 }
 0x259   : > { %p1068_p13 = por %p1067_p6, %p1066_p0 }
 0x25b   : > { %p1069_p2 = pnand %p1068_p13, %p1062_p3 }
 0x25d   : > { %1072 = shalt.err (!%p1069_p2)
}
 0x25e   : > { %881 = dma.vmem_to_hbm [thread:$0]  (%p1541_p9), %s1472_s12, 1024, %s1477_s7, %s661_s13, %s1138_s10, %s1138_s10, %s1139_s6  }
 0x25f PF: > { %s714_s5 = sand.u32 1, %s1111_s15   ;;  %p1542_p5 = scmp.ne.s32.totalorder %s1538_s30, 0 }
 0x260   : > { %p1543_p4 = scmp.ge.s32.totalorder %s1131_s20, 2  ;;  %s715_s8 = scalar_lea.sflag [#allocation4], %s714_s5 }
 0x262   : > { %p890_p7 = pnand %p1543_p4, %p1542_p5 }
 0x264   : > { %1102 = dma.done.wait (!%p890_p7), %s715_s8, 1024  }
 0x265   : > { %1104 = vsyncadd (!%p890_p7), %s715_s8, 4294966272  ;;  %s724_s28 = scalar_lea.sflag [#allocation7], %s714_s5 }
 0x266   : > { %1106 = dma.done.wait (!%p890_p7), %s724_s28, 2048  }
 0x267   : > { %1108 = vsyncadd (!%p890_p7), %s724_s28, 4294965248  ;;  %s24_s20 = sadd.s32 1, %s1131_s20   ;;  %s1544_s15 = smov %s1115_s16 }
 0x268   : > { %p21_p10 = scmp.ge.s32.totalorder %s24_s20, 4   ;;  %s1545_s16 = smov %s1119_s17 }
 0x269   : > { %s1546_s17 = smov %s1222_s29  ;;  %s1547_s18 = smov %s1127_s19 }
 0x26a   : > { %s1548_s19 = smov %s1550_s23  ;;  %23 = sbr.rel (!%p21_p10) target bundleno = 8 (0x8), region = 94 }
 0x271   :  { %729 = vsyncpa [#allocation3], 1 }
 0x272   :  { %731 = vsyncpa [#allocation3 + $0x1], 1 }
 0x273   :  { %732 = vsyncpa [#allocation4], 1 }
 0x274   :  { %734 = vsyncpa [#allocation4 + $0x1], 1 }
 0x275   :  { %735 = vsyncpa [#allocation7], 1 }
 0x276   :  { %737 = vsyncpa [#allocation7 + $0x1], 1 }

</bundles_post_ra>
